<compile_context>
chip_gen: v7x
topology: tpu7x:2x2x1
jax: 0.10.0
libtpu: 0.0.40
codegen_flags: <defaults>
</compile_context>

<pallas_src>
import jax
import jax.numpy as jnp
from jax.experimental import pallas as pl
from jax.experimental.pallas import tpu as pltpu

_MIB = 1024 * 1024
_LANE = 128


def _normalization_kernel(img_ref, mean_ref, std_ref, out_ref):
    # img_ref / out_ref: (rows, cols) tile of the flattened (N*C, H*W) image.
    # mean_ref / std_ref: (rows, 1) per-row channel statistics in f32.
    x = img_ref[...].astype(jnp.float32)
    scale = 1.0 / std_ref[...]  # tiny (rows, 1) tile; exact f32 reciprocal
    out_ref[...] = ((x - mean_ref[...]) * scale).astype(out_ref.dtype)


def _chip_block_budget():
    """Per-generation block budget (bytes) chosen against scoped-VMEM defaults."""
    try:
        kind = jax.devices()[0].device_kind.lower()
    except Exception:
        kind = ""
    if "v7" in kind:
        return 8 * _MIB   # 64 MiB/TC physical; vmem_limit raised explicitly below
    if "v5" in kind:
        return 2 * _MIB   # keep 4x block (double-buffered in+out) under 16 MiB default
    return 6 * _MIB       # v6e and unknown: 32 MiB default scoped limit


def _pick_block(nc, hw, itemsize, budget_bytes):
    """Fixed, aligned (rows, cols) block; ragged edges handled by a cdiv grid."""
    sub_mult = 8 * max(1, 4 // itemsize)   # sublane packing: 8 f32 / 16 bf16 / 32 int8
    elem_budget = max(_LANE, budget_bytes // itemsize)

    # Lane axis: full H*W when it fits the budget, else the largest 128-multiple cap.
    if hw <= elem_budget:
        cols = hw
    else:
        cols = max(_LANE, (elem_budget // _LANE) * _LANE)

    # Sublane axis: as many dtype-aligned rows as the remaining budget allows.
    max_rows = max(1, elem_budget // cols)
    if nc <= max_rows:
        rows = nc
    else:
        rows = min(nc, max(sub_mult, (max_rows // sub_mult) * sub_mult))

    # Keep >= 2 grid steps on a parallel axis for non-trivial sizes so the second
    # TensorCore on v7x-class chips gets work (no effect on 1-TC v5e/v6e).
    total_bytes = nc * hw * itemsize
    if pl.cdiv(nc, rows) * pl.cdiv(hw, cols) == 1 and total_bytes >= 256 * 1024:
        if hw >= 2 * _LANE:
            cols = max(_LANE, (hw // 2 // _LANE) * _LANE)
        elif nc >= 2 * sub_mult:
            rows = max(sub_mult, (nc // 2 // sub_mult) * sub_mult)

    return rows, cols


def normalization(img, mean, std, *, block_budget_bytes=None):
    """(img - mean[:, None, None]) / std[:, None, None] for an NCHW img."""
    N, C, H, W = img.shape
    NC, HW = N * C, H * W

    if block_budget_bytes is None:
        block_budget_bytes = _chip_block_budget()

    # Per-channel statistics in f32 (PyTorch keeps stats in full precision),
    # expanded to one value per (n, c) row of the flattened (N*C, H*W) view.
    mean32 = jnp.asarray(mean, dtype=jnp.float32).reshape(-1)
    std32 = jnp.asarray(std, dtype=jnp.float32).reshape(-1)
    assert mean32.shape == (C,) and std32.shape == (C,)
    mean_rows = jnp.tile(mean32, N).reshape(NC, 1)
    std_rows = jnp.tile(std32, N).reshape(NC, 1)

    img2d = img.reshape(NC, HW)

    rows, cols = _pick_block(NC, HW, img.dtype.itemsize, block_budget_bytes)
    grid = (pl.cdiv(NC, rows), pl.cdiv(HW, cols))

    # Double-buffered input + output tiles (+ tiny stat tiles) with headroom;
    # stays well under every generation's physical VMEM (64 MiB/TC on v7x).
    block_bytes = rows * cols * img.dtype.itemsize
    vmem_limit = max(16 * _MIB, min(4 * block_bytes + 4 * _MIB, 48 * _MIB))

    out2d = pl.pallas_call(
        _normalization_kernel,
        out_shape=jax.ShapeDtypeStruct((NC, HW), img.dtype),
        grid=grid,
        in_specs=[
            pl.BlockSpec((rows, cols), lambda i, j: (i, j)),
            pl.BlockSpec((rows, 1), lambda i, j: (i, 0)),
            pl.BlockSpec((rows, 1), lambda i, j: (i, 0)),
        ],
        out_specs=pl.BlockSpec((rows, cols), lambda i, j: (i, j)),
        compiler_params=pltpu.CompilerParams(
            dimension_semantics=("parallel", "parallel"),
            vmem_limit_bytes=vmem_limit,
        ),
    )(img2d, mean_rows, std_rows)

    return out2d.reshape(N, C, H, W)


if __name__ == "__main__":
    key = jax.random.PRNGKey(0)

    N, C, H, W = 2, 4, 16, 16
    img = jax.random.normal(key, (N, C, H, W), dtype=jnp.float32)

    # Deterministic per-channel statistics (module __init__ takes mean/std lists).
    mean = jnp.array([0.485, 0.456, 0.406, 0.5], dtype=jnp.float32)
    std = jnp.array([0.229, 0.224, 0.225, 0.25], dtype=jnp.float32)

    out = normalization(img, mean, std)
    out = jax.block_until_ready(out)

    # Reference check against plain JAX broadcasting (PyTorch semantics).
    ref = (img - mean[None, :, None, None]) / std[None, :, None, None]
    assert out.shape == img.shape and out.dtype == img.dtype
    assert jnp.allclose(out, ref, atol=1e-6, rtol=1e-5)

    print("KERNEL_OK")
</pallas_src>

<mosaic_0001>
module attributes {stable_mosaic.version = 11 : i64} {
  func.func @_normalization_kernel(%arg0: i32, %arg1: i32, %arg2: memref<8x256xf32, #tpu.memory_space<vmem>>, %arg3: memref<8x1xf32, #tpu.memory_space<vmem>>, %arg4: memref<8x1xf32, #tpu.memory_space<vmem>>, %arg5: memref<8x256xf32, #tpu.memory_space<vmem>>) attributes {dimension_semantics = [#tpu.dimension_semantics<parallel>, #tpu.dimension_semantics<parallel>], iteration_bounds = array<i64: 1, 1>, scalar_prefetch = 0 : i64, scratch_operands = 0 : i64, tpu.core_type = #tpu.core_type<tc>, window_params = [{transform_indices = @transform_0, window_bounds = array<i64: 8, 256>}, {transform_indices = @transform_1, window_bounds = array<i64: 8, 1>}, {transform_indices = @transform_2, window_bounds = array<i64: 8, 1>}, {transform_indices = @transform_3, window_bounds = array<i64: 8, 256>}]} {
    %c0 = arith.constant 0 : index
    %c0_0 = arith.constant 0 : index
    %0 = vector.load %arg2[%c0, %c0_0] : memref<8x256xf32, #tpu.memory_space<vmem>>, vector<8x256xf32>
    %c0_1 = arith.constant 0 : index
    %c0_2 = arith.constant 0 : index
    %1 = vector.load %arg4[%c0_1, %c0_2] : memref<8x1xf32, #tpu.memory_space<vmem>>, vector<8x1xf32>
    %cst = arith.constant 1.000000e+00 : f32
    %2 = vector.broadcast %cst : f32 to vector<8x1xf32>
    %3 = arith.divf %2, %1 : vector<8x1xf32>
    %c0_3 = arith.constant 0 : index
    %c0_4 = arith.constant 0 : index
    %4 = vector.load %arg3[%c0_3, %c0_4] : memref<8x1xf32, #tpu.memory_space<vmem>>, vector<8x1xf32>
    %5 = vector.broadcast %4 : vector<8x1xf32> to vector<8x256xf32>
    %6 = arith.subf %0, %5 : vector<8x256xf32>
    %7 = vector.broadcast %3 : vector<8x1xf32> to vector<8x256xf32>
    %8 = arith.mulf %6, %7 : vector<8x256xf32>
    %c0_5 = arith.constant 0 : index
    %c0_6 = arith.constant 0 : index
    %9 = vector.load %arg5[%c0_5, %c0_6] : memref<8x256xf32, #tpu.memory_space<vmem>>, vector<8x256xf32>
    tpu.vector_store %arg5[%c0_5, %c0_6], %8 {strides = array<i32>} : memref<8x256xf32, #tpu.memory_space<vmem>>, vector<8x256xf32>,
    return
  }
  func.func @transform_0(%arg0: i32, %arg1: i32) -> (i32, i32) {
    %c0_i32 = arith.constant 0 : i32
    return %arg0, %arg1 : i32, i32
  }
  func.func @transform_1(%arg0: i32, %arg1: i32) -> (i32, i32) {
    %c0_i32 = arith.constant 0 : i32
    %c0_i32_0 = arith.constant 0 : i32
    return %arg0, %c0_i32 : i32, i32
  }
  func.func @transform_2(%arg0: i32, %arg1: i32) -> (i32, i32) {
    %c0_i32 = arith.constant 0 : i32
    %c0_i32_0 = arith.constant 0 : i32
    return %arg0, %c0_i32 : i32, i32
  }
  func.func @transform_3(%arg0: i32, %arg1: i32) -> (i32, i32) {
    %c0_i32 = arith.constant 0 : i32
    return %arg0, %arg1 : i32, i32
  }
}

</mosaic_0001>

<bundles_post_ra>
// kernel: tpu_custom_call.1
= control target key start
LH: loop header
LB: loop body
LE: loop exit
PB: predicated region body
PF: predicated region fallthrough
CT: control target
= control target key end

     0   :  { %s126_s0 = inlined_call_operand.vmem [shape: f32[8,256], index: 0, kind: input, shape index: {}]   ;;  %s127_s1 = inlined_call_operand.vmem [shape: f32[8,1], index: 1, kind: input, shape index: {}]   ;;  %s128_s2 = inlined_call_operand.vmem [shape: f32[8,1], index: 2, kind: input, shape index: {}]   ;;  %s129_s3 = inlined_call_operand.hbm [shape: f32[8,256], index: 3, kind: output, shape index: {}]  }
   0x1   :  { %v20_v0 = vld [vmem:[%s127_s1] sm:$0xff] }
   0x2   :  { %v17_v1 = vld [vmem:[%s128_s2] sm:$0xff] }
   0x3   :  { %8 = vsyncpa [#allocation3], 0  ;;  %v80_v2 = vmov 0   ;;  %54 = vrcp.f32 %v17_v1  ;;  %v15_v5 = vld [vmem:[%s126_s0] sm:$0xff]  ;;  %v16_v6 = vld [vmem:[%s126_s0 + $0x8] sm:$0xff]  ;;  %s81_s1 = smov [#allocation2]  }
   0x4   :  { %53 = vset.pattern.permute.xlu0 %v80_v2  ;;  %s43_s20 = sshll.u32 %s81_s1, 4  ;;  %s44_s20 = int_to_ptr.vmem [resolvable:$true] %s43_s20 }
   0x5   :  { %23 = vperm.xlu0 %53, %v20_v0   ;;  %s56_s2 = scalar_lea.vmem %s44_s20, 256  ;;  %p61_p1 = scmp.lt.s32.totalorder %s44_s20, %s44_s20 }
   0x6   :  { %p57_p0 = scmp.ne.s32.totalorder %s44_s20, %s56_s2  ;;  %p62_p2 = scmp.lt.s32.totalorder %s56_s2, %s56_s2 }
   0x8   :  { %p63_p3 = por %p62_p2, %p61_p1 }
   0xa   :  { %p64_p4 = pnand %p63_p3, %p57_p0 }
   0xd   :  { %v55_v3 = vpop.eup %54 }
   0xe   :  { %30 = vperm.xlu0 %53, %v55_v3  }
  0x84   :  { %v24_v4 = vpop.permute.xlu0 %23 }
  0x85   :  { %v26_v7 = vsub.f32 %v15_v5, %v24_v4  ;;  %v27_v8 = vsub.f32 %v16_v6, %v24_v4 }
  0x8d   :  { %v31_v9 = vpop.permute.xlu0 %30 }
  0x8e   :  { %v33_v10 = vmul.f32 %v31_v9, %v26_v7  ;;  %v34_v11 = vmul.f32 %v31_v9, %v27_v8 }
  0x90   :  { %35 = vst [vmem:[#allocation2] sm:$0xff] %v33_v10  ;;  %36 = vst [vmem:[#allocation2 + $0x8] sm:$0xff] %v34_v11 }
  0x91   :  { %67 = shalt.err (!%p64_p4)
}
  0x92   :  { %s68_s0 = scalar_lea.hbm %s129_s3, 256 }
  0x93   :  { %p69_p5 = scmp.ne.s32.totalorder %s129_s3, %s68_s0  ;;  %p72_p6 = scmp.lt.u32.totalorder %s68_s0, %s129_s3 }
  0x95   :  { %p74_p7 = pnand %p72_p6, %p69_p5 }
  0x97   :  { %77 = shalt.err (!%p74_p7)
}
  0x98   :  { %46 = dma.vmem_to_hbm [thread:$0]  %s44_s20, 256, %s129_s3, [#allocation3]  }
  0x99   :  { %78 = dma.done.wait [#allocation3], 256  }
  0x9a   :  { %79 = vsyncadd [#allocation3], 4294967040 }
  0x9b   :  { %50 = vsyncpa [#allocation3], 1 }

</bundles_post_ra>
